<compile_context>
chip_gen: v7x
topology: tpu7x:2x2x1
jax: 0.10.0
libtpu: 0.0.40
codegen_flags: <defaults>
</compile_context>

<pallas_src>
import functools
import math

import jax
import jax.numpy as jnp
from jax import lax
from jax.experimental import pallas as pl
from jax.experimental.pallas import tpu as pltpu

N_EMBD = 384          # C, fixed by the module
BLOCK_SIZE = 256      # max seq len (tril buffer size in the module)
NEG_INF = -1e30       # large-negative instead of -inf (same softmax, NaN-safe)


def _head_kernel(x_ref, w_ref, mask_ref, o_ref, q_s, k_s, v_s, *, scale):
    """One (batch, q-tile) grid step.

    x_ref:    (1, T, C)   bf16  input block (same block for every q tile)
    w_ref:    (3H, C)     bf16  fused [Wk; Wq; Wv], PyTorch (out, in) layout
    mask_ref: (TQ, T)     f32   additive causal bias (0 / NEG_INF)
    o_ref:    (1, TQ, H)  f32   output block
    q_s/k_s/v_s: (T, H)   bf16  per-batch VMEM scratch (projections)
    """
    qi = pl.program_id(1)
    tq, h = o_ref.shape[1], o_ref.shape[2]

    @pl.when(qi == 0)
    def _():
        # Fused QKV projection for the whole sequence, once per batch element.
        # dot_general contracts on C so the (3H, C) weight is consumed
        # directly (no transpose); f32 accumulation on the MXU.
        qkv = lax.dot_general(
            x_ref[0], w_ref[...],
            dimension_numbers=(((1,), (1,)), ((), ())),
            preferred_element_type=jnp.float32,
        )                                                   # (T, 3H) f32
        k_s[...] = qkv[:, 0 * h:1 * h].astype(k_s.dtype)
        q_s[...] = qkv[:, 1 * h:2 * h].astype(q_s.dtype)
        v_s[...] = qkv[:, 2 * h:3 * h].astype(v_s.dtype)

    q_start = pl.multiple_of(qi * tq, tq)
    q = q_s[pl.ds(q_start, tq), :]                          # (TQ, H) bf16

    # scores: q @ k^T, contraction on H, no materialized k.T
    s = lax.dot_general(
        q, k_s[...],
        dimension_numbers=(((1,), (1,)), ((), ())),
        preferred_element_type=jnp.float32,
    )                                                       # (TQ, T) f32
    s = s * scale + mask_ref[...]                           # causal bias

    # softmax over keys (f32)
    m = jnp.max(s, axis=-1, keepdims=True)
    p = jnp.exp(s - m)
    denom = jnp.sum(p, axis=-1, keepdims=True)
    p = p * pl.reciprocal(denom, approx=True)

    # dropout: identity (eval mode)

    out = jnp.dot(p.astype(v_s.dtype), v_s[...],
                  preferred_element_type=jnp.float32)       # (TQ, H) f32
    o_ref[0] = out.astype(o_ref.dtype)


def _pick_q_tile(t):
    if t <= 128:
        return t
    for cand in (128, 64, 32, 16, 8):
        if t % cand == 0:
            return cand
    return t


@jax.jit
def head_forward(x, w_key, w_query, w_value):
    """x: (B, T, C) f32; w_*: (head_size, n_embd) f32 (PyTorch Linear layout)."""
    B, T, C = x.shape
    H = w_key.shape[0]
    assert C == N_EMBD and T <= BLOCK_SIZE

    tq = _pick_q_tile(T)
    n_q = T // tq

    # Fused QKV weight, PyTorch (out_features, in_features) layout: (3H, C).
    # Matmul inputs in bf16 (f32 accumulation inside the kernel).
    w_qkv = jnp.concatenate([w_key, w_query, w_value], axis=0).astype(jnp.bfloat16)
    x_bf16 = x.astype(jnp.bfloat16)

    # Causal mask hoisted out of the kernel as an additive bias (tril == 0 -> -inf).
    row = lax.broadcasted_iota(jnp.int32, (T, T), 0)
    col = lax.broadcasted_iota(jnp.int32, (T, T), 1)
    mask_bias = jnp.where(col <= row, 0.0, NEG_INF).astype(jnp.float32)

    kernel = functools.partial(_head_kernel, scale=1.0 / math.sqrt(C))

    return pl.pallas_call(
        kernel,
        out_shape=jax.ShapeDtypeStruct((B, T, H), jnp.float32),
        grid_spec=pltpu.PrefetchScalarGridSpec(
            num_scalar_prefetch=0,
            grid=(B, n_q),
            in_specs=[
                pl.BlockSpec((1, T, C), lambda b, qi: (b, 0, 0)),   # x, per batch
                pl.BlockSpec((3 * H, C), lambda b, qi: (0, 0)),     # fused W_qkv
                pl.BlockSpec((tq, T), lambda b, qi: (qi, 0)),       # causal bias
            ],
            out_specs=pl.BlockSpec((1, tq, H), lambda b, qi: (b, qi, 0)),
            scratch_shapes=[
                pltpu.VMEM((T, H), jnp.bfloat16),   # q
                pltpu.VMEM((T, H), jnp.bfloat16),   # k
                pltpu.VMEM((T, H), jnp.bfloat16),   # v
            ],
        ),
        compiler_params=pltpu.CompilerParams(
            dimension_semantics=("parallel", "arbitrary"),
        ),
    )(x_bf16, w_qkv, mask_bias)


def _reference(x, w_key, w_query, w_value):
    """Pure-JAX reference mirroring the PyTorch forward (eval mode, f32)."""
    B, T, C = x.shape
    k = x @ w_key.T
    q = x @ w_query.T
    v = x @ w_value.T
    wei = q @ jnp.swapaxes(k, -2, -1) / math.sqrt(C)
    mask = jnp.tril(jnp.ones((T, T), jnp.float32)) == 0
    wei = jnp.where(mask[None, :, :], -jnp.inf, wei)
    wei = jax.nn.softmax(wei, axis=2)
    return wei @ v


if __name__ == "__main__":
    # C = n_embd = 384 (fixed by the module), head_size = 64 (= 384 / 6 heads).
    B, C, H = 2, N_EMBD, 64

    key = jax.random.PRNGKey(0)
    kx, kk, kq, kv = jax.random.split(key, 4)
    bound = 1.0 / math.sqrt(C)
    w_key = jax.random.uniform(kk, (H, C), jnp.float32, -bound, bound)
    w_query = jax.random.uniform(kq, (H, C), jnp.float32, -bound, bound)
    w_value = jax.random.uniform(kv, (H, C), jnp.float32, -bound, bound)

    # Small case (T=16, single q tile) and full-block case (T=256, tiled path).
    for T in (16, BLOCK_SIZE):
        x = jax.random.normal(jax.random.fold_in(kx, T), (B, T, C), jnp.float32)
        out = jax.block_until_ready(head_forward(x, w_key, w_query, w_value))
        ref = _reference(x, w_key, w_query, w_value)
        assert out.shape == (B, T, H)
        err = float(jnp.max(jnp.abs(out - ref)))
        # bf16 matmuls vs. pure-f32 reference -> relaxed tolerance.
        assert err < 3e-2, err

    print("KERNEL_OK")
</pallas_src>

<mosaic_0001>
module attributes {stable_mosaic.version = 11 : i64} {
  func.func @_head_kernel(%arg0: i32, %arg1: i32, %arg2: memref<1x16x384xbf16, #tpu.memory_space<vmem>>, %arg3: memref<192x384xbf16, #tpu.memory_space<vmem>>, %arg4: memref<16x16xf32, #tpu.memory_space<vmem>>, %arg5: memref<1x16x64xf32, #tpu.memory_space<vmem>>, %arg6: memref<16x64xbf16, #tpu.memory_space<vmem>>, %arg7: memref<16x64xbf16, #tpu.memory_space<vmem>>, %arg8: memref<16x64xbf16, #tpu.memory_space<vmem>>) attributes {dimension_semantics = [#tpu.dimension_semantics<parallel>, #tpu.dimension_semantics<arbitrary>], iteration_bounds = array<i64: 2, 1>, scalar_prefetch = 0 : i64, scratch_operands = 3 : i64, tpu.core_type = #tpu.core_type<tc>, window_params = [{transform_indices = @transform_0, window_bounds = array<i64: 1, 16, 384>}, {pipeline_mode = #tpu.pipeline_mode<synchronous>, transform_indices = @transform_1, window_bounds = array<i64: 192, 384>}, {transform_indices = @transform_2, window_bounds = array<i64: 16, 16>}, {transform_indices = @transform_3, window_bounds = array<i64: 1, 16, 64>}]} {
    %c0_i32 = arith.constant 0 : i32
    %0 = arith.cmpi eq, %arg1, %c0_i32 : i32
    %1 = arith.extui %0 : i1 to i32
    %c0_i32_0 = arith.constant 0 : i32
    %2 = arith.cmpi ne, %1, %c0_i32_0 : i32
    scf.if %2 {
      %c0_14 = arith.constant 0 : index
      %c0_15 = arith.constant 0 : index
      %c0_16 = arith.constant 0 : index
      %29 = vector.load %arg2[%c0_14, %c0_15, %c0_16] : memref<1x16x384xbf16, #tpu.memory_space<vmem>>, vector<1x16x384xbf16>
      %30 = vector.shape_cast %29 : vector<1x16x384xbf16> to vector<16x384xbf16>
      %c0_17 = arith.constant 0 : index
      %c0_18 = arith.constant 0 : index
      %31 = vector.load %arg3[%c0_17, %c0_18] : memref<192x384xbf16, #tpu.memory_space<vmem>>, vector<192x384xbf16>
      %cst_19 = arith.constant dense<0.000000e+00> : vector<16x192xf32>
      %32 = tpu.matmul %30, %31, %cst_19 {dimension_numbers = #tpu.dot_dimension_numbers<[1], [1], [0], [0], [0, 0, 1, 0], [], []>} : vector<16x384xbf16>, vector<192x384xbf16>, vector<16x192xf32> -> vector<16x192xf32>
      %33 = vector.extract_strided_slice %32 {offsets = [0, 0], sizes = [16, 64], strides = [1, 1]} : vector<16x192xf32> to vector<16x64xf32>
      %34 = arith.truncf %33 : vector<16x64xf32> to vector<16x64xbf16>
      %c0_20 = arith.constant 0 : index
      %c0_21 = arith.constant 0 : index
      %35 = vector.load %arg7[%c0_20, %c0_21] : memref<16x64xbf16, #tpu.memory_space<vmem>>, vector<16x64xbf16>
      tpu.vector_store %arg7[%c0_20, %c0_21], %34 {strides = array<i32>} : memref<16x64xbf16, #tpu.memory_space<vmem>>, vector<16x64xbf16>,
      %36 = vector.extract_strided_slice %32 {offsets = [0, 64], sizes = [16, 64], strides = [1, 1]} : vector<16x192xf32> to vector<16x64xf32>
      %37 = arith.truncf %36 : vector<16x64xf32> to vector<16x64xbf16>
      %c0_22 = arith.constant 0 : index
      %c0_23 = arith.constant 0 : index
      %38 = vector.load %arg6[%c0_22, %c0_23] : memref<16x64xbf16, #tpu.memory_space<vmem>>, vector<16x64xbf16>
      tpu.vector_store %arg6[%c0_22, %c0_23], %37 {strides = array<i32>} : memref<16x64xbf16, #tpu.memory_space<vmem>>, vector<16x64xbf16>,
      %39 = vector.extract_strided_slice %32 {offsets = [0, 128], sizes = [16, 64], strides = [1, 1]} : vector<16x192xf32> to vector<16x64xf32>
      %40 = arith.truncf %39 : vector<16x64xf32> to vector<16x64xbf16>
      %c0_24 = arith.constant 0 : index
      %c0_25 = arith.constant 0 : index
      %41 = vector.load %arg8[%c0_24, %c0_25] : memref<16x64xbf16, #tpu.memory_space<vmem>>, vector<16x64xbf16>
      tpu.vector_store %arg8[%c0_24, %c0_25], %40 {strides = array<i32>} : memref<16x64xbf16, #tpu.memory_space<vmem>>, vector<16x64xbf16>,
    } else {
    }
    %c16_i32 = arith.constant 16 : i32
    %3 = arith.muli %arg1, %c16_i32 : i32
    %4 = tpu.assume_multiple %3, 16 : i32
    %5 = arith.index_cast %4 : i32 to index
    %c0 = arith.constant 0 : index
    %6 = vector.load %arg6[%5, %c0] : memref<16x64xbf16, #tpu.memory_space<vmem>>, vector<16x64xbf16>
    %c0_1 = arith.constant 0 : index
    %c0_2 = arith.constant 0 : index
    %7 = vector.load %arg7[%c0_1, %c0_2] : memref<16x64xbf16, #tpu.memory_space<vmem>>, vector<16x64xbf16>
    %cst = arith.constant dense<0.000000e+00> : vector<16x16xf32>
    %8 = tpu.matmul %6, %7, %cst {dimension_numbers = #tpu.dot_dimension_numbers<[1], [1], [0], [0], [0, 0, 1, 0], [], []>} : vector<16x64xbf16>, vector<16x64xbf16>, vector<16x16xf32> -> vector<16x16xf32>
    %cst_3 = arith.constant 0.0510310382 : f32
    %9 = vector.broadcast %cst_3 : f32 to vector<16x16xf32>
    %10 = arith.mulf %8, %9 : vector<16x16xf32>
    %c0_4 = arith.constant 0 : index
    %c0_5 = arith.constant 0 : index
    %11 = vector.load %arg4[%c0_4, %c0_5] : memref<16x16xf32, #tpu.memory_space<vmem>>, vector<16x16xf32>
    %12 = arith.addf %10, %11 : vector<16x16xf32>
    %cst_6 = arith.constant dense<0xFF800000> : vector<16xf32>
    %13 = vector.multi_reduction <maximumf>, %12, %cst_6 [1] : vector<16x16xf32> to vector<16xf32>
    %14 = vector.shape_cast %13 : vector<16xf32> to vector<16x1xf32>
    %15 = vector.broadcast %14 : vector<16x1xf32> to vector<16x16xf32>
    %16 = arith.subf %12, %15 : vector<16x16xf32>
    %17 = math.exp %16 : vector<16x16xf32>
    %cst_7 = arith.constant dense<0.000000e+00> : vector<16xf32>
    %18 = vector.multi_reduction <add>, %17, %cst_7 [1] : vector<16x16xf32> to vector<16xf32>
    %19 = vector.shape_cast %18 : vector<16xf32> to vector<16x1xf32>
    %20 = tpu.reciprocal %19 {approx = true} : vector<16x1xf32> -> vector<16x1xf32>
    %21 = vector.broadcast %20 : vector<16x1xf32> to vector<16x16xf32>
    %22 = arith.mulf %17, %21 : vector<16x16xf32>
    %23 = arith.truncf %22 : vector<16x16xf32> to vector<16x16xbf16>
    %c0_8 = arith.constant 0 : index
    %c0_9 = arith.constant 0 : index
    %24 = vector.load %arg8[%c0_8, %c0_9] : memref<16x64xbf16, #tpu.memory_space<vmem>>, vector<16x64xbf16>
    %cst_10 = arith.constant dense<0.000000e+00> : vector<16x64xf32>
    %25 = tpu.matmul %23, %24, %cst_10 {dimension_numbers = #tpu.dot_dimension_numbers<[1], [0], [0], [1], [0, 0, 1, 1], [], []>} : vector<16x16xbf16>, vector<16x64xbf16>, vector<16x64xf32> -> vector<16x64xf32>
    %c0_11 = arith.constant 0 : index
    %c0_12 = arith.constant 0 : index
    %c0_13 = arith.constant 0 : index
    %26 = vector.load %arg5[%c0_11, %c0_12, %c0_13] : memref<1x16x64xf32, #tpu.memory_space<vmem>>, vector<1x16x64xf32>
    %27 = vector.shape_cast %26 : vector<1x16x64xf32> to vector<16x64xf32>
    %28 = vector.shape_cast %25 : vector<16x64xf32> to vector<1x16x64xf32>
    tpu.vector_store %arg5[%c0_11, %c0_12, %c0_13], %28 {strides = array<i32>} : memref<1x16x64xf32, #tpu.memory_space<vmem>>, vector<1x16x64xf32>,
    return
  }
  func.func @transform_0(%arg0: i32, %arg1: i32) -> (i32, i32, i32) {
    %c0_i32 = arith.constant 0 : i32
    %c0_i32_0 = arith.constant 0 : i32
    %c0_i32_1 = arith.constant 0 : i32
    return %arg0, %c0_i32, %c0_i32_0 : i32, i32, i32
  }
  func.func @transform_1(%arg0: i32, %arg1: i32) -> (i32, i32) {
    %c0_i32 = arith.constant 0 : i32
    %c0_i32_0 = arith.constant 0 : i32
    %c0_i32_1 = arith.constant 0 : i32
    return %c0_i32, %c0_i32_0 : i32, i32
  }
  func.func @transform_2(%arg0: i32, %arg1: i32) -> (i32, i32) {
    %c0_i32 = arith.constant 0 : i32
    %c0_i32_0 = arith.constant 0 : i32
    return %arg1, %c0_i32 : i32, i32
  }
  func.func @transform_3(%arg0: i32, %arg1: i32) -> (i32, i32, i32) {
    %c0_i32 = arith.constant 0 : i32
    %c0_i32_0 = arith.constant 0 : i32
    return %arg0, %arg1, %c0_i32 : i32, i32, i32
  }
}

</mosaic_0001>

<bundles_post_ra>
// kernel: head_forward.1
= control target key start
LH: loop header
LB: loop body
LE: loop exit
PB: predicated region body
PF: predicated region fallthrough
CT: control target
= control target key end

     0   :  { %8 = vsyncpa [#allocation6], 0  ;;  %s1368_s0 = inlined_call_operand.vmem [shape: bf16[2,16,384], index: 0, kind: input, shape index: {}]   ;;  %s1369_s1 = inlined_call_operand.vmem [shape: bf16[192,384], index: 1, kind: input, shape index: {}]   ;;  %s1370_s2 = inlined_call_operand.vmem [shape: f32[16,16], index: 2, kind: input, shape index: {}]   ;;  %s1371_s3 = inlined_call_operand.hbm [shape: f32[2,16,64], index: 3, kind: output, shape index: {}]  }
   0x1   :  { %10 = vsyncpa [#allocation6 + $0x1], 0  ;;  %s1109_s12 = smov 0   ;;  %s1111_s13 = smov 0  }
   0x2   :  { %s1113_s14 = smov 0   ;;  %s1115_s15 = smov 0  }
   0x3   :  { %s1117_s16 = smov 0   ;;  %s1119_s17 = smov 0  }
   0x4 LB: > { %s805_s18 = sadd.s32 4294967295, %s1080_s17   ;;  %s806_s19 = sadd.s32 4294967294, %s1080_s17   ;;  %s1080_s17 = sphi %s1119_s17, %s16_s17   ;;  %s1076_s16 = sphi %s1117_s16, %s1378_s16   ;;  %s1072_s15 = sphi %s1115_s15, %s1377_s15   ;;  %s1068_s14 = sphi %s1113_s14, %s1376_s14   ;;  %s1064_s13 = sphi %s1111_s13, %s1375_s13   ;;  %s1060_s12 = sphi %s1109_s12, %s1374_s12  }
   0x5   : > { %s28_s20 = sadd.s32 1, %s1076_s16  ;;  %s110_s21 = sadd.s32 1, %s1068_s14 }
   0x6   : > { %p30_p0 = scmp.ge.s32.totalorder %s28_s20, 2  ;;  %p120_p1 = scmp.ne.s32.totalorder %s1068_s14, %s1064_s13 }
   0x7   : > { %p121_p2 = scmp.eq.s32.totalorder %s805_s18, 1  ;;  %p126_p3 = scmp.ne.s32.totalorder %s1064_s13, %s1060_s12 }
   0x8   : > { %s1380_s20 = smov (%p30_p0, %s28_s20), 0  ;;  %p127_p5 = scmp.eq.s32.totalorder %s806_s19, 1 }
   0x9   : > { %p1149_p4 = por %p121_p2, %p120_p1  ;;  %s105_s23 = ssub.s32 %s1076_s16, %s1380_s20 }
   0xa   : > { %p810_p6 = scmp.ge.s32.totalorder %s1080_s17, 1  ;;  %p108_p7 = scmp.eq.s32.totalorder %s105_s23, 0 }
   0xb   : > { %p1156_p8 = por %p127_p5, %p126_p3  ;;  %p165_p9 = scmp.lt.s32.totalorder %s1080_s17, 3 }
   0xc   : > { %s1162_s25 = scalar_select %p108_p7, %s1068_s14, %s110_s21  }
   0xd   : > { %p166_p10 = pnand %p810_p6, %p165_p9 }
   0xe   : > { %v942_v0 = vld [vmem:[%s1369_s1 + $0x4] ss:$12 sps:$4 sm:$0xff] (!%p166_p10)   ;;  %v1082_v1 = vmov (!%p166_p10), 0   ;;  %v944_v2 = vld [vmem:[%s1369_s1 + $0x8] ss:$12 sps:$4 sm:$0xff] (!%p166_p10)   ;;  %p194_p11 = scmp.lt.s32.totalorder (!%p166_p10), %s1072_s15, 1 }
   0xf   : > { %169 = sbr.rel (%p166_p10) target bundleno = 1218 (0x4c2), region = 32  ;;  %514 = vmatprep.subr.bf16.mxu0 (!%p166_p10), %v1082_v1  ;;  %546 = vmatprep.mubr.bf16.mxu0 (!%p166_p10), %v1082_v1  ;;  %v945_v3 = vld [vmem:[%s1369_s1] ss:$12 sps:$4 sm:$0xff] (!%p166_p10)   ;;  %v946_v4 = vld [vmem:[%s1369_s1 + $0x1c] ss:$12 sps:$4 sm:$0xff] (!%p166_p10)   ;;  %v1083_v40 = vmov (!%p166_p10), 0.0  }
  0x10   : > { %471 = vmatprep.subr.bf16.mxu1 (!%p166_p10), %v942_v0  ;;  %515 = vmatpush1.bf16.xpose.msra.mxu0 (!%p166_p10), %v944_v2  ;;  %v948_v5 = vld [vmem:[%s1369_s1 + $0x20] ss:$12 sps:$4 sm:$0xff] (!%p166_p10)   ;;  %v949_v6 = vld [vmem:[%s1369_s1 + $0x18] ss:$12 sps:$4 sm:$0xff] (!%p166_p10)   ;;  %v953_v9 = vld [vmem:[%s1369_s1 + $0x30] ss:$12 sps:$4 sm:$0xff] (!%p166_p10)  }
  0x11   : > { %472 = vmatpush1.bf16.xpose.msra.mxu1 (!%p166_p10), %v945_v3  ;;  %516 = vmatprep.subr.bf16.mxu0 (!%p166_p10), %v1082_v1  ;;  %v950_v7 = vld [vmem:[%s1369_s1 + $0x34] ss:$12 sps:$4 sm:$0xff] (!%p166_p10)   ;;  %v952_v8 = vld [vmem:[%s1369_s1 + $0x38] ss:$12 sps:$4 sm:$0xff] (!%p166_p10)   ;;  %v956_v11 = vld [vmem:[%s1369_s1 + $0x50] ss:$12 sps:$4 sm:$0xff] (!%p166_p10)  }
  0x12   : > { %473 = vmatprep.subr.bf16.mxu1 (!%p166_p10), %v946_v4  ;;  %v954_v10 = vld [vmem:[%s1369_s1 + $0x4c] ss:$12 sps:$4 sm:$0xff] (!%p166_p10)   ;;  %v957_v12 = vld [vmem:[%s1369_s1 + $0x48] ss:$12 sps:$4 sm:$0xff] (!%p166_p10)   ;;  %v958_v13 = vld [vmem:[%s1369_s1 + $0x64] ss:$12 sps:$4 sm:$0xff] (!%p166_p10)  }
  0x13   : > { %v960_v15 = vld [vmem:[%s1369_s1 + $0x68] ss:$12 sps:$4 sm:$0xff] (!%p166_p10)   ;;  %v961_v16 = vld [vmem:[%s1369_s1 + $0x60] ss:$12 sps:$4 sm:$0xff] (!%p166_p10)   ;;  %v965_v19 = vld [vmem:[%s1369_s1 + $0x78] ss:$12 sps:$4 sm:$0xff] (!%p166_p10)  }
  0x14   : > { %v962_v17 = vld [vmem:[%s1369_s1 + $0x7c] ss:$12 sps:$4 sm:$0xff] (!%p166_p10)   ;;  %v964_v18 = vld [vmem:[%s1369_s1 + $0x80] ss:$12 sps:$4 sm:$0xff] (!%p166_p10)   ;;  %v968_v21 = vld [vmem:[%s1369_s1 + $0x98] ss:$12 sps:$4 sm:$0xff] (!%p166_p10)  }
  0x15   : > { %v966_v20 = vld [vmem:[%s1369_s1 + $0x94] ss:$12 sps:$4 sm:$0xff] (!%p166_p10)   ;;  %v969_v22 = vld [vmem:[%s1369_s1 + $0x90] ss:$12 sps:$4 sm:$0xff] (!%p166_p10)   ;;  %v970_v23 = vld [vmem:[%s1369_s1 + $0xac] ss:$12 sps:$4 sm:$0xff] (!%p166_p10)  }
  0x16   : > { %s195_s29 = scalar_select %p194_p11, %s1072_s15, 1  ;;  %v972_v24 = vld [vmem:[%s1369_s1 + $0xb0] ss:$12 sps:$4 sm:$0xff]   ;;  %v973_v25 = vld [vmem:[%s1369_s1 + $0xa8] ss:$12 sps:$4 sm:$0xff]   ;;  %vm1084_vm0 = vmmov 0  }
  0x17   : > { %v974_v26 = vld [vmem:[%s1369_s1 + $0xc4] ss:$12 sps:$4 sm:$0xff]   ;;  %v976_v27 = vld [vmem:[%s1369_s1 + $0xc8] ss:$12 sps:$4 sm:$0xff]   ;;  %v977_v28 = vld [vmem:[%s1369_s1 + $0xc0] ss:$12 sps:$4 sm:$0xff]  }
  0x18   : > { %517 = vmatpush1.bf16.xpose.msra.mxu0 %v948_v5  ;;  %s880_s30 = smul.u32 24, %s195_s29  ;;  %v978_v29 = vld [vmem:[%s1369_s1 + $0xdc] ss:$12 sps:$4 sm:$0xff]   ;;  %v980_v30 = vld [vmem:[%s1369_s1 + $0xe0] ss:$12 sps:$4 sm:$0xff]   ;;  %vm558_vm1 = vcmask 523264  }
  0x19   : > { %474 = vmatpush1.bf16.xpose.msra.mxu1 %v949_v6  ;;  %518 = vmatprep.subr.bf16.mxu0 %v1082_v1  ;;  %v981_v31 = vld [vmem:[%s1369_s1 + $0xd8] ss:$12 sps:$4 sm:$0xff]   ;;  %v982_v32 = vld [vmem:[%s1369_s1 + $0xf4] ss:$12 sps:$4 sm:$0xff]   ;;  %v985_v34 = vld [vmem:[%s1369_s1 + $0xf0] ss:$12 sps:$4 sm:$0xff]  }
  0x1a   : > { %475 = vmatprep.subr.bf16.mxu1 %v950_v7  ;;  %s1213_s18 = scalar_lea.vmem %s1368_s0, %s880_s30  ;;  %v984_v33 = vld [vmem:[%s1369_s1 + $0xf8] ss:$12 sps:$4 sm:$0xff]   ;;  %v988_v36 = vld [vmem:[%s1369_s1 + $0x110] ss:$12 sps:$4 sm:$0xff]   ;;  %v989_v37 = vld [vmem:[%s1369_s1 + $0x108] ss:$12 sps:$4 sm:$0xff]  }
  0x1b   : > { %v992_v14 = vld [vmem:[%s1213_s18 + $0x4] ss:$12 sps:$4 sm:$0xff]   ;;  %v986_v35 = vld [vmem:[%s1369_s1 + $0x10c] ss:$12 sps:$4 sm:$0xff]   ;;  %v993_v38 = vld [vmem:[%s1213_s18 + $0x8] ss:$12 sps:$4 sm:$0xff]  }
  0x1c   : > { %503 = vmatprep.mubr.bf16.mxu1 %v992_v14  ;;  %v990_v39 = vld [vmem:[%s1213_s18] ss:$12 sps:$4 sm:$0xff]   ;;  %s1085_s18 = smov 64   ;;  %vm628_vm2 = vcmask 130048   ;;  %s191_s23 = sand.u32 1, %s1064_s13  }
  0x1d   : > { %v624_v61 = vld [vmem:[%s1370_s2] sm:$0xff]  ;;  %s811_s26 = sshll.u32 %s191_s23, 4  ;;  %s859_s29 = sshll.u32 %s1072_s15, 8 }
  0x1e   : > { %s193_s27 = scalar_lea.vmem [#allocation5], %s811_s26  ;;  %s1318_s5 = scalar_lea.hbm %s1371_s3, %s859_s29 }
  0x1f   : > { %s715_s28 = sshll.u32 %s193_s27, 4  ;;  %s1322_s6 = scalar_lea.sflag [#allocation6], %s191_s23  ;;  %s1313_s28 = int_to_ptr.vmem [resolvable:$true] %s715_s28 }
  0x20   : > { %519 = vmatpush1.bf16.xpose.msra.mxu0 %v952_v8  ;;  %s1002_s15 = scalar_lea.vmem %s1313_s28, 256  ;;  %s1086_s7 = smov [#allocation5]  }
  0x21   : > { %476 = vmatpush1.bf16.xpose.msra.mxu1 %v953_v9  ;;  %520 = vmatprep.subr.bf16.mxu0 %v1082_v1  ;;  %p1003_p12 = scmp.ne.s32.totalorder %s1313_s28, %s1002_s15  ;;  %s1006_s8 = sshll.u32 %s1086_s7, 4  ;;  %s1007_s8 = int_to_ptr.vmem [resolvable:$false] %s1006_s8 }
  0x22   : > { %477 = vmatprep.subr.bf16.mxu1 %v954_v10  ;;  %s1008_s9 = scalar_lea.vmem %s1007_s8, 512  ;;  %p1009_p1 = scmp.lt.s32.totalorder %s1313_s28, %s1007_s8 }
  0x23   : > { %p1004_p13 = pnand %p1003_p12, %p1149_p4  ;;  %p1010_p2 = scmp.lt.s32.totalorder %s1008_s9, %s1002_s15 }
  0x25   : > { %p1005_p0 = pneg %p1004_p13  ;;  %p1011_p3 = por %p1010_p2, %p1009_p1 }
  0x27   : > { %p1012_p5 = pnand %p1011_p3, %p1005_p0 }
  0x28   : > { %521 = vmatpush1.bf16.xpose.msra.mxu0 %v956_v11 }
  0x29   : > { %478 = vmatpush1.bf16.xpose.msra.mxu1 %v957_v12  ;;  %522 = vmatprep.subr.bf16.mxu0 %v1082_v1 }
  0x2a   : > { %479 = vmatprep.subr.bf16.mxu1 %v958_v13 }
  0x30   : > { %523 = vmatpush1.bf16.xpose.msra.mxu0 %v960_v15 }
  0x31   : > { %480 = vmatpush1.bf16.xpose.msra.mxu1 %v961_v16  ;;  %524 = vmatprep.subr.bf16.mxu0 %v1082_v1 }
  0x32   : > { %481 = vmatprep.subr.bf16.mxu1 %v962_v17 }
  0x38   : > { %525 = vmatpush1.bf16.xpose.msra.mxu0 %v964_v18 }
  0x39   : > { %482 = vmatpush1.bf16.xpose.msra.mxu1 %v965_v19  ;;  %526 = vmatprep.subr.bf16.mxu0 %v1082_v1 }
  0x3a   : > { %483 = vmatprep.subr.bf16.mxu1 %v966_v20 }
  0x40   : > { %527 = vmatpush1.bf16.xpose.msra.mxu0 %v968_v21 }
  0x41   : > { %484 = vmatpush1.bf16.xpose.msra.mxu1 %v969_v22  ;;  %528 = vmatprep.subr.bf16.mxu0 %v1082_v1 }
  0x42   : > { %485 = vmatprep.subr.bf16.mxu1 %v970_v23 }
  0x48   : > { %529 = vmatpush1.bf16.xpose.msra.mxu0 %v972_v24 }
  0x49   : > { %486 = vmatpush1.bf16.xpose.msra.mxu1 %v973_v25  ;;  %530 = vmatprep.subr.bf16.mxu0 %v1082_v1 }
  0x4a   : > { %487 = vmatprep.subr.bf16.mxu1 %v974_v26 }
  0x50   : > { %531 = vmatpush1.bf16.xpose.msra.mxu0 %v976_v27 }
  0x51   : > { %488 = vmatpush1.bf16.xpose.msra.mxu1 %v977_v28  ;;  %532 = vmatprep.subr.bf16.mxu0 %v1082_v1 }
  0x52   : > { %489 = vmatprep.subr.bf16.mxu1 %v978_v29 }
  0x58   : > { %533 = vmatpush1.bf16.xpose.msra.mxu0 %v980_v30 }
  0x59   : > { %490 = vmatpush1.bf16.xpose.msra.mxu1 %v981_v31  ;;  %534 = vmatprep.subr.bf16.mxu0 %v1082_v1 }
  0x5a   : > { %491 = vmatprep.subr.bf16.mxu1 %v982_v32 }
  0x60   : > { %535 = vmatpush1.bf16.xpose.msra.mxu0 %v984_v33 }
  0x61   : > { %492 = vmatpush1.bf16.xpose.msra.mxu1 %v985_v34  ;;  %536 = vmatprep.subr.bf16.mxu0 %v1082_v1  ;;  %v625_v1 = vld [vmem:[%s1370_s2 + $0x8] sm:$0xff] }
  0x62   : > { %493 = vmatprep.subr.bf16.mxu1 %v986_v35 }
  0x68   : > { %537 = vmatpush1.bf16.xpose.msra.mxu0 %v988_v36 }
  0x69   : > { %494 = vmatpush1.bf16.xpose.msra.mxu1 %v989_v37  ;;  %864 = vmatprep.subr.bf16.mxu0 %v1083_v40 }
  0x6a   : > { %870 = vmatprep.subr.bf16.mxu1 %v1083_v40 }
  0x6f   : > { %547 = vmatmul.mubr.bf16.vlgmr.msra.gmra.mrb[0].mxu0 %v993_v38 }
  0x70   : > { %504 = vmatmul.mubr.bf16.vlgmr.msra.gmra.mrb[0].mxu1 %v990_v39  ;;  %866 = vmatprep.mubr.msk.bf16.mxu0 %vm1084_vm0, %v1083_v40 }
  0x71   : > { %872 = vmatprep.mubr.msk.bf16.mxu1 %vm1084_vm0, %v1083_v40 }
 0x142   : > { %v548_v41 = vpop.f32.mrb[0].mxu0 }
 0x143   : > { %v505_v42 = vpop.f32.mrb[0].mxu1  ;;  %v550_v43 = vpop.f32.mrb[1].mxu0 }
 0x144   : > { %v549_v44 = vadd.f32 %v548_v41, %v505_v42  ;;  %v507_v45 = vpop.f32.mrb[1].mxu1  ;;  %v552_v46 = vpop.f32.mrb[2].mxu0 }
 0x145   : > { %v551_v47 = vadd.f32 %v550_v43, %v507_v45  ;;  %v509_v48 = vpop.f32.mrb[2].mxu1  ;;  %v554_v49 = vpop.f32.mrb[3].mxu0 }
 0x146   : > { %v553_v50 = vadd.f32 %v552_v46, %v509_v48  ;;  %v511_v51 = vpop.f32.mrb[3].mxu1 }
 0x147   : > { %v555_v52 = vadd.f32 %v554_v49, %v511_v51 }
 0x148   : > { %v557_v53 = vpack.c.bf16 %v553_v50, %v549_v44 }
 0x149   : > { %v565_v54 = vpack.c.bf16 %v555_v52, %v551_v47 }
 0x14a   : > { %561 = vrot.lane.b32.xlu0 %v557_v53, %s1085_s18  ;;  %559 = vst.msk [vmem:[#allocation3] sm:$0xff] %vm558_vm1, %v557_v53 }
 0x14b   : > { %566 = vst.msk [vmem:[#allocation4] sm:$0xff] %vm558_vm1, %v565_v54 }
 0x151   : > { %v573_v55 = vld [vmem:[#allocation3] sm:$0xff] }
 0x152   : > { %v579_v56 = vsel %vm558_vm1, %v573_v55, 0  ;;  %v652_v57 = vld [vmem:[#allocation4] sm:$0xff] }
 0x153   : > { %865 = vmatpush3.bf16.xpose.msra.mxu0 %v579_v56  ;;  %871 = vmatpush3.bf16.msra.mxu1 %v652_v57 }
 0x1bc   : > { %v562_v58 = vpop.permute.xlu0 %561 }
 0x1bd   : > { %564 = vst.msk [vmem:[#allocation2] sm:$0xff] %vm558_vm1, %v562_v58 }
 0x1c4   : > { %v572_v59 = vld [vmem:[#allocation2] sm:$0xff] }
 0x1c5   : > { %867 = vmatmul.mubr.msk.bf16.vlgmr.msra.gmra.mrb[4].mxu0 %vm558_vm1, %v572_v59 }
 0x298   : > { %v615_v60 = vpop.f32.mrb[4].mxu0 }
 0x299   : > { %v622_v62 = vmul.f32 0.05103104, %v615_v60  ;;  %v868_v63 = vpop.f32.mrb[5].mxu0 }
 0x29a   : > { %v618_v0 = vpop.f32.mrb[6].mxu0 }
 0x29b   : > { %v623_v2 = vmul.f32 0.05103104, %v618_v0  ;;  %v869_v3 = vpop.f32.mrb[7].mxu0  ;;  %v626_v4 = vadd.f32 %v624_v61, %v622_v62 }
 0x29d   : > { %v629_v5 = vsel %vm628_vm2, %v626_v4, -inf  ;;  %v627_v6 = vadd.f32 %v625_v1, %v623_v2 }
 0x29e   : > { %630 = vmax.xlane.f32.xlu0 %v629_v5 }
 0x29f   : > { %v632_v7 = vsel %vm628_vm2, %v627_v6, -inf }
 0x2a0   : > { %633 = vmax.xlane.f32.xlu1 %v632_v7 }
 0x32b   : > { %v631_v8 = vpop.xlane.xlu0 %630 }
 0x32c   : > { %v635_v9 = vsub.f32 %v626_v4, %v631_v8 }
 0x32d   : > { %v634_v10 = vpop.xlane.xlu1 %633 }
 0x32e   : > { %v637_v11 = vmul.f32 1.442695, %v635_v9  ;;  %v636_v12 = vsub.f32 %v627_v6, %v634_v10 }
 0x330   : > { %994 = vpow2.f32 %v637_v11  ;;  %v639_v13 = vmul.f32 1.442695, %v636_v12 }
 0x332   : > { %996 = vpow2.f32 %v639_v13 }
 0x33a   : > { %v995_v14 = vpop.eup %994 }
 0x33b   : > { %v641_v15 = vsel %vm628_vm2, %v995_v14, 0.0 }
 0x33c   : > { %v997_v16 = vpop.eup %996  ;;  %642 = vadd.xlane.f32.xlu1 %v641_v15 }
 0x33d   : > { %v644_v17 = vsel %vm628_vm2, %v997_v16, 0.0 }
 0x340   : > { %645 = vadd.xlane.f32.xlu1 %v644_v17 }
 0x3c9   : > { %v643_v18 = vpop.xlane.xlu1 %642 }
 0x3ca   : > { %998 = vrcp.f32 %v643_v18 }
 0x3cd   : > { %v646_v19 = vpop.xlane.xlu1 %645 }
 0x3ce   : > { %1000 = vrcp.f32 %v646_v19 }
 0x3d4   : > { %v999_v20 = vpop.eup %998 }
 0x3d5   : > { %v649_v22 = vmul.f32 %v999_v20, %v995_v14 }
 0x3d8   : > { %v1001_v21 = vpop.eup %1000 }
 0x3d9   : > { %v650_v23 = vmul.f32 %v1001_v21, %v997_v16 }
 0x3db   : > { %v651_v24 = vpack.c.bf16 %v650_v23, %v649_v22 }
 0x3dd   : > { %873 = vmatmul.mubr.msk.bf16.vlgmr.msra.gmra.mrb[4].mxu1 %vm628_vm2, %v651_v24 }
 0x4b0   : > { %v690_v25 = vpop.f32.mrb[4].mxu1 }
 0x4b1   : > { %697 = vst.msk [vmem:[%s193_s27] sm:$0xff] %vm558_vm1, %v690_v25  ;;  %v874_v26 = vpop.f32.mrb[5].mxu1 }
 0x4b2   : > { %v693_v27 = vpop.f32.mrb[6].mxu1 }
 0x4b3   : > { %698 = vst.msk [vmem:[%s193_s27 + $0x8] sm:$0xff] %vm558_vm1, %v693_v27  ;;  %v875_v28 = vpop.f32.mrb[7].mxu1 }
 0x4b4   : > { %1015 = shalt.err (!%p1012_p5)
}
 0x4b5   : > { %s1016_s18 = scalar_lea.hbm %s1318_s5, 256  ;;  %s1020_s19 = scalar_lea.hbm %s1371_s3, 512 }
 0x4b6   : > { %p1017_p6 = scmp.ne.s32.totalorder %s1318_s5, %s1016_s18  ;;  %p1021_p10 = scmp.lt.u32.totalorder %s1318_s5, %s1371_s3 }
 0x4b7   : > { %p1022_p11 = scmp.lt.u32.totalorder %s1020_s19, %s1016_s18  ;;  %p1024_p13 = scmp.lt.u32.totalorder %s1016_s18, %s1318_s5 }
 0x4b8   : > { %p1018_p7 = pnand %p1017_p6, %p1149_p4 }
 0x4b9   : > { %p1023_p12 = por %p1022_p11, %p1021_p10 }
 0x4ba   : > { %p1019_p9 = pneg %p1018_p7 }
 0x4bb   : > { %p1025_p0 = por %p1024_p13, %p1023_p12 }
 0x4bd   : > { %p1026_p1 = pnand %p1025_p0, %p1019_p9 }
 0x4bf   : > { %1029 = shalt.err (!%p1026_p1)
}
 0x4c0   : > { %s1087_s26 = smov 128   ;;  %s1088_s27 = smov 8  }
 0x4c1   : > { %881 = dma.vmem_to_hbm [thread:$0]  (%p1149_p4), %s1313_s28, 256, %s1318_s5, %s1322_s6, %s1087_s26, %s1087_s26, %s1088_s27  }
 0x4c2 PF: > { %p887_p2 = scmp.ge.s32.totalorder %s1080_s17, 2  ;;  %s730_s29 = sand.u32 1, %s1060_s12  }
 0x4c3   : > { %s731_s30 = scalar_lea.sflag [#allocation6], %s730_s29 }
 0x4c4   : > { %p884_p3 = pnand %p887_p2, %p1156_p8 }
 0x4c6   : > { %1055 = dma.done.wait (!%p884_p3), %s731_s30, 256  }
 0x4c7   : > { %1057 = vsyncadd (!%p884_p3), %s731_s30, 4294967040  ;;  %s16_s17 = sadd.s32 1, %s1080_s17   ;;  %s1374_s12 = smov %s1064_s13 }
 0x4c8   : > { %p13_p5 = scmp.ge.s32.totalorder %s16_s17, 4   ;;  %s1375_s13 = smov %s1068_s14 }
 0x4c9   : > { %s1376_s14 = smov %s1162_s25  ;;  %s1377_s15 = smov %s1076_s16 }
 0x4ca   : > { %s1378_s16 = smov %s1380_s20  ;;  %15 = sbr.rel (!%p13_p5) target bundleno = 4 (0x4), region = 75 }
 0x4d1   :  { %736 = vsyncpa [#allocation6], 1 }
 0x4d2   :  { %738 = vsyncpa [#allocation6 + $0x1], 1 }

</bundles_post_ra>
